<compile_context>
chip_gen: v5e
topology: v5e:2x2
jax: 0.10.0
libtpu: 0.0.40
codegen_flags: <defaults>
</compile_context>

<pallas_src>
import functools

import jax
import jax.numpy as jnp
from jax.experimental import pallas as pl
from jax.experimental.pallas import tpu as pltpu

_LANE = 128
_SUBLANE = 8


def _round_up(x, m):
    return (x + m - 1) // m * m


def _sublane_mult(itemsize):
    # Sub-32-bit dtypes pack along sublanes: f32 -> 8 rows/vreg, bf16 -> 16,
    # int8/fp8 -> 32.  Rounding row tiles to this avoids half-packed vregs.
    return _SUBLANE * max(4 // max(int(itemsize), 1), 1)


def _vmem_capacity_bytes():
    """Physical VMEM per TensorCore (64 MiB on v7x, 128 MiB on v5e/v6e)."""
    try:
        return int(pltpu.get_tpu_info().vmem_capacity_bytes)
    except Exception:
        return 64 * 1024 * 1024  # conservative fallback, valid on all gens


# --------------------------------------------------------------------------
# Kernels
# --------------------------------------------------------------------------
def _fused_affine_kernel(x_ref, gamma_ref, beta_ref, o_ref, *, nelem, eps):
    """Single pass: whole sample (1, G, s) resident -> stats + normalize."""
    x = x_ref[...].astype(jnp.float32)
    total = jnp.sum(x)
    total_sq = jnp.sum(x * x)
    mean = total * (1.0 / nelem)
    denom = float(max(nelem - 1, 1))          # torch.std default: unbiased (ddof=1)
    var = jnp.maximum((total_sq - nelem * mean * mean) / denom, 0.0)
    inv = 1.0 / (jnp.sqrt(var) + eps)         # reference divides by (std + eps)
    scale = gamma_ref[...] * inv               # (1, G, 1)
    shift = beta_ref[...] - mean * scale       # (1, G, 1)
    o_ref[...] = (x * scale + shift).astype(o_ref.dtype)


def _fused_noaffine_kernel(x_ref, o_ref, *, nelem, eps):
    x = x_ref[...].astype(jnp.float32)
    total = jnp.sum(x)
    total_sq = jnp.sum(x * x)
    mean = total * (1.0 / nelem)
    denom = float(max(nelem - 1, 1))
    var = jnp.maximum((total_sq - nelem * mean * mean) / denom, 0.0)
    inv = 1.0 / (jnp.sqrt(var) + eps)
    o_ref[...] = ((x - mean) * inv).astype(o_ref.dtype)


def _stats_kernel(x_ref, mean_ref, inv_ref, *, nelem, eps):
    """Two-pass fallback, pass 1: accumulate sum / sum-of-squares over all
    tiles of one sample, finalize in place to (mean, 1/(std+eps)).

    mean_ref / inv_ref are (1, 1, 128) f32 output blocks revisited across the
    tile axes; they double as accumulators (all lanes hold the running value).
    """
    jr = pl.program_id(1)
    js = pl.program_id(2)

    @pl.when((jr == 0) & (js == 0))
    def _init():
        mean_ref[...] = jnp.zeros_like(mean_ref)
        inv_ref[...] = jnp.zeros_like(inv_ref)

    x = x_ref[...].astype(jnp.float32)
    mean_ref[...] = mean_ref[...] + jnp.sum(x)
    inv_ref[...] = inv_ref[...] + jnp.sum(x * x)

    @pl.when((jr == pl.num_programs(1) - 1) & (js == pl.num_programs(2) - 1))
    def _finalize():
        total = mean_ref[...]
        total_sq = inv_ref[...]
        mean = total * (1.0 / nelem)
        denom = float(max(nelem - 1, 1))
        # Single-pass E[x^2] - mean^2 in f32; clamp for numerical safety.
        var = jnp.maximum((total_sq - nelem * mean * mean) / denom, 0.0)
        mean_ref[...] = mean
        inv_ref[...] = 1.0 / (jnp.sqrt(var) + eps)


def _normalize_affine_kernel(x_ref, mean_ref, inv_ref, gamma_ref, beta_ref,
                             o_ref, *, tg):
    """Two-pass fallback, pass 2: out = x*scale + shift (one FMA per element).
    gamma/beta are a single resident (1, G, 1) block; slice the rows we need."""
    mean = mean_ref[0, 0, 0]
    inv = inv_ref[0, 0, 0]
    row0 = pl.multiple_of(pl.program_id(1) * tg, _SUBLANE)
    scale = gamma_ref[:, pl.ds(row0, tg), :] * inv            # (1, tg, 1)
    shift = beta_ref[:, pl.ds(row0, tg), :] - mean * scale    # (1, tg, 1)
    o_ref[...] = (x_ref[...].astype(jnp.float32) * scale + shift).astype(o_ref.dtype)


def _normalize_noaffine_kernel(x_ref, mean_ref, inv_ref, o_ref):
    mean = mean_ref[0, 0, 0]
    inv = inv_ref[0, 0, 0]
    o_ref[...] = ((x_ref[...].astype(jnp.float32) - mean) * inv).astype(o_ref.dtype)


# --------------------------------------------------------------------------
# Layout / tiling heuristics (host-side, static-shape Python)
# --------------------------------------------------------------------------
def _choose_layout(C, H, W, smult):
    """Pick (rows_per_channel r, inner s) with r*s == H*W so the per-sample
    slab (C*r, s) wastes as little padded vreg space as possible while every
    row belongs to exactly one channel (keeps the affine a (rows,1) bcast)."""
    HW = H * W
    candidates = [(1, HW)]
    if HW % _LANE == 0:
        candidates.append((HW // _LANE, _LANE))
    if H > 1:
        candidates.append((H, W))

    def cost(rs):
        r, s = rs
        rows = C * r
        padded = _round_up(rows, smult) * _round_up(s, _LANE)
        return (padded, -s)  # tie-break: prefer wider (lane-dense) inner dim

    return min(candidates, key=cost)


def _choose_tiles(G, s, max_block_elems, smult):
    """Pick (TG, TS) for the tiled fallback.  TS: multiple-of-128 divisor of s
    when s is 128-aligned, else the full (ragged) s.  TG: divisor of G that is
    a multiple of the sublane packing, or G itself (full dim is always legal)."""
    max_block_elems = max(int(max_block_elems), smult * _LANE)
    g_pad = _round_up(G, smult)

    if s % _LANE == 0:
        n_lane_blocks = s // _LANE
        ts = _LANE
        for k in range(n_lane_blocks, 0, -1):
            if n_lane_blocks % k == 0 and g_pad * k * _LANE <= max_block_elems:
                ts = k * _LANE
                break
    else:
        ts = s  # block last dim == full array dim: legal, masked ld/st in-kernel

    if g_pad * _round_up(ts, _LANE) <= max_block_elems:
        return G, ts

    # Tall row dimension: tile rows too.  Candidates are divisors of G that are
    # multiples of the sublane packing (so every block satisfies the (8,128)
    # rule and stays fully packed).
    row_limit = max(max_block_elems // _round_up(ts, _LANE), smult)
    cands = []
    d = 1
    while d * d <= G:
        if G % d == 0:
            for c in (d, G // d):
                if c % smult == 0:
                    cands.append(c)
        d += 1
    fitting = [c for c in cands if c <= row_limit]
    if fitting:
        return max(fitting), ts
    if cands:
        # No divisor fits the budget: take the smallest packed divisor instead
        # of the whole G (never over-subscribe VMEM by more than necessary).
        return min(cands), ts
    return G, ts  # tiny G with no packed divisor: full dim is legal


# --------------------------------------------------------------------------
# Wrapper
# --------------------------------------------------------------------------
def layer_norm(x, gamma=None, beta=None, *, eps=1e-5, affine=True,
               _force_two_pass=False):
    """x: (N, C, H, W) NCHW. gamma, beta: (C,) (only used when affine=True)."""
    N, C, H, W = x.shape
    L = C * H * W
    itemsize = int(jnp.dtype(x.dtype).itemsize)
    smult = _sublane_mult(itemsize)

    r, s = _choose_layout(C, H, W, smult)
    G = C * r
    # Row-major reshape is metadata-only (no HBM traffic).  No host-side pad:
    # ragged lane tails are handled by masked loads/stores/reductions in-kernel.
    x3 = x.reshape(N, G, s)

    cap = _vmem_capacity_bytes()
    vmem_limit = cap * 3 // 4  # 96 MiB on v5e/v6e, 48 MiB on v7x

    gamma_rows = beta_rows = None
    if affine:
        if gamma is None or beta is None:
            raise ValueError("affine=True requires gamma and beta")
        gamma_rows = jnp.repeat(gamma.astype(jnp.float32), r).reshape(1, G, 1)
        beta_rows = jnp.repeat(beta.astype(jnp.float32), r).reshape(1, G, 1)

    # ---- Fused single-pass path: whole per-sample slab resident in VMEM ----
    g_pad = _round_up(G, smult)
    s_pad = _round_up(s, _LANE)
    slab_io = g_pad * s_pad * itemsize          # one input/output pipeline buffer
    slab_f32 = g_pad * s_pad * 4                # in-kernel f32 temporaries
    fused_need = 4 * slab_io + 2 * slab_f32 + (256 << 10)
    use_fused = (not _force_two_pass) and (fused_need <= vmem_limit)

    if use_fused:
        x_spec = pl.BlockSpec((1, G, s), lambda i: (i, 0, 0))
        if affine:
            kernel = functools.partial(_fused_affine_kernel, nelem=L, eps=float(eps))
            param_spec = pl.BlockSpec((1, G, 1), lambda i: (0, 0, 0))
            inputs = (x3, gamma_rows, beta_rows)
            in_specs = [x_spec, param_spec, param_spec]
        else:
            kernel = functools.partial(_fused_noaffine_kernel, nelem=L, eps=float(eps))
            inputs = (x3,)
            in_specs = [x_spec]
        out3 = pl.pallas_call(
            kernel,
            out_shape=jax.ShapeDtypeStruct((N, G, s), x.dtype),
            grid_spec=pltpu.PrefetchScalarGridSpec(
                num_scalar_prefetch=0,
                grid=(N,),
                in_specs=in_specs,
                out_specs=x_spec,
            ),
            compiler_params=pltpu.CompilerParams(
                dimension_semantics=("parallel",),
                vmem_limit_bytes=int(vmem_limit),
            ),
        )(*inputs)
        return out3.reshape(N, C, H, W)

    # ---- Two-pass tiled fallback (sample too large for VMEM residency) -----
    # Pass 1 only double-buffers the input block (+ f32 temps); pass 2
    # double-buffers input and output (+ f32 temp) -> separate budgets.
    elems1 = int(vmem_limit * 0.7) // (2 * itemsize + 8)
    elems2 = int(vmem_limit * 0.7) // (4 * itemsize + 8)
    TG1, TS1 = _choose_tiles(G, s, elems1, smult)
    TG2, TS2 = _choose_tiles(G, s, elems2, smult)

    # Pass 1: per-sample mean and 1/(std+eps).
    grid1 = (N, G // TG1, s // TS1)
    x_spec1 = pl.BlockSpec((1, TG1, TS1), lambda i, jr, js: (i, jr, js))
    stat_spec1 = pl.BlockSpec((1, 1, _LANE), lambda i, jr, js: (i, 0, 0))
    stats_kernel = functools.partial(_stats_kernel, nelem=L, eps=float(eps))
    mean, inv = pl.pallas_call(
        stats_kernel,
        out_shape=(
            jax.ShapeDtypeStruct((N, 1, _LANE), jnp.float32),
            jax.ShapeDtypeStruct((N, 1, _LANE), jnp.float32),
        ),
        grid_spec=pltpu.PrefetchScalarGridSpec(
            num_scalar_prefetch=0,
            grid=grid1,
            in_specs=[x_spec1],
            out_specs=(stat_spec1, stat_spec1),
        ),
        compiler_params=pltpu.CompilerParams(
            dimension_semantics=("parallel", "arbitrary", "arbitrary"),
            vmem_limit_bytes=int(vmem_limit),
        ),
    )(x3)

    # Pass 2: fused scale/shift normalize.
    grid2 = (N, G // TG2, s // TS2)
    x_spec2 = pl.BlockSpec((1, TG2, TS2), lambda i, jr, js: (i, jr, js))
    stat_spec2 = pl.BlockSpec((1, 1, _LANE), lambda i, jr, js: (i, 0, 0))
    if affine:
        param_spec = pl.BlockSpec((1, G, 1), lambda i, jr, js: (0, 0, 0))  # resident
        inputs = (x3, mean, inv, gamma_rows, beta_rows)
        in_specs = [x_spec2, stat_spec2, stat_spec2, param_spec, param_spec]
        norm_kernel = functools.partial(_normalize_affine_kernel, tg=TG2)
    else:
        inputs = (x3, mean, inv)
        in_specs = [x_spec2, stat_spec2, stat_spec2]
        norm_kernel = _normalize_noaffine_kernel

    out3 = pl.pallas_call(
        norm_kernel,
        out_shape=jax.ShapeDtypeStruct((N, G, s), x.dtype),
        grid_spec=pltpu.PrefetchScalarGridSpec(
            num_scalar_prefetch=0,
            grid=grid2,
            in_specs=in_specs,
            out_specs=x_spec2,
        ),
        compiler_params=pltpu.CompilerParams(
            # Every output block is distinct -> all axes parallel (both TCs
            # busy on v7x even for small N).
            dimension_semantics=("parallel", "parallel", "parallel"),
            vmem_limit_bytes=int(vmem_limit),
        ),
    )(*inputs)
    return out3.reshape(N, C, H, W)


# --------------------------------------------------------------------------
# Pure-JAX reference mirroring the PyTorch module semantics
# --------------------------------------------------------------------------
def layer_norm_ref(x, gamma=None, beta=None, *, eps=1e-5, affine=True):
    N = x.shape[0]
    flat = x.reshape(N, -1)
    mean = flat.mean(axis=1).reshape((N,) + (1,) * (x.ndim - 1))
    std = flat.std(axis=1, ddof=1).reshape((N,) + (1,) * (x.ndim - 1))  # unbiased
    y = (x - mean) / (std + eps)
    if affine:
        shape = (1, -1) + (1,) * (x.ndim - 2)
        y = gamma.reshape(shape) * y + beta.reshape(shape)
    return y


if __name__ == "__main__":
    key = jax.random.PRNGKey(0)
    k1, k2 = jax.random.split(key)

    N, C, H, W = 2, 4, 16, 16
    x = jax.random.normal(k1, (N, C, H, W), dtype=jnp.float32)
    # Deterministic, non-trivial affine params (module default is ones/zeros,
    # but forward must work for any learned values).
    gamma = 1.0 + 0.1 * jnp.arange(C, dtype=jnp.float32)
    beta = 0.05 * jnp.arange(C, dtype=jnp.float32) - 0.1

    # Fused single-pass path, affine.
    out = jax.block_until_ready(layer_norm(x, gamma, beta, eps=1e-5, affine=True))
    ref = layer_norm_ref(x, gamma, beta, eps=1e-5, affine=True)
    assert out.shape == (N, C, H, W)
    assert jnp.allclose(out, ref, atol=1e-5, rtol=1e-5), "mismatch (fused affine)"

    # Fused single-pass path, no affine (no gamma/beta built or DMA'd).
    out_na = jax.block_until_ready(layer_norm(x, eps=1e-5, affine=False))
    ref_na = layer_norm_ref(x, eps=1e-5, affine=False)
    assert jnp.allclose(out_na, ref_na, atol=1e-5, rtol=1e-5), "mismatch (fused noaffine)"

    # Unaligned inner dim (7x7): exercises the no-pad masked-lane handling.
    x7 = jax.random.normal(k2, (2, 4, 7, 7), dtype=jnp.float32)
    out7 = jax.block_until_ready(layer_norm(x7, gamma, beta, eps=1e-5, affine=True))
    ref7 = layer_norm_ref(x7, gamma, beta, eps=1e-5, affine=True)
    assert jnp.allclose(out7, ref7, atol=1e-5, rtol=1e-5), "mismatch (unaligned)"

    # Tiled two-pass fallback path, forced at the small shape for coverage.
    out_tp = jax.block_until_ready(
        layer_norm(x, gamma, beta, eps=1e-5, affine=True, _force_two_pass=True))
    assert jnp.allclose(out_tp, ref, atol=1e-5, rtol=1e-5), "mismatch (two-pass)"

    print("KERNEL_OK")
</pallas_src>

<mosaic_0001>
module attributes {stable_mosaic.version = 11 : i64} {
  func.func @_fused_affine_kernel(%arg0: i32, %arg1: memref<1x8x128xf32, #tpu.memory_space<vmem>>, %arg2: memref<1x8x1xf32, #tpu.memory_space<vmem>>, %arg3: memref<1x8x1xf32, #tpu.memory_space<vmem>>, %arg4: memref<1x8x128xf32, #tpu.memory_space<vmem>>) attributes {dimension_semantics = [#tpu.dimension_semantics<parallel>], iteration_bounds = array<i64: 2>, scalar_prefetch = 0 : i64, scratch_operands = 0 : i64, tpu.core_type = #tpu.core_type<tc>, window_params = [{transform_indices = @transform_0, window_bounds = array<i64: 1, 8, 128>}, {pipeline_mode = #tpu.pipeline_mode<synchronous>, transform_indices = @transform_1, window_bounds = array<i64: 1, 8, 1>}, {pipeline_mode = #tpu.pipeline_mode<synchronous>, transform_indices = @transform_2, window_bounds = array<i64: 1, 8, 1>}, {transform_indices = @transform_3, window_bounds = array<i64: 1, 8, 128>}]} {
    %c0 = arith.constant 0 : index
    %c0_0 = arith.constant 0 : index
    %c0_1 = arith.constant 0 : index
    %0 = vector.load %arg1[%c0, %c0_0, %c0_1] : memref<1x8x128xf32, #tpu.memory_space<vmem>>, vector<1x8x128xf32>
    %1 = vector.shape_cast %0 : vector<1x8x128xf32> to vector<1x1x8x128xf32>
    %cst = arith.constant dense<0.000000e+00> : vector<1xf32>
    %2 = vector.multi_reduction <add>, %1, %cst [1, 2, 3] : vector<1x1x8x128xf32> to vector<1xf32>
    %3 = vector.shape_cast %2 : vector<1xf32> to vector<1x1x1x1xf32>
    %4 = vector.extract %3[0, 0, 0, 0] : f32 from vector<1x1x1x1xf32>
    %5 = arith.mulf %0, %0 : vector<1x8x128xf32>
    %6 = vector.shape_cast %5 : vector<1x8x128xf32> to vector<1x1x8x128xf32>
    %cst_2 = arith.constant dense<0.000000e+00> : vector<1xf32>
    %7 = vector.multi_reduction <add>, %6, %cst_2 [1, 2, 3] : vector<1x1x8x128xf32> to vector<1xf32>
    %8 = vector.shape_cast %7 : vector<1xf32> to vector<1x1x1x1xf32>
    %9 = vector.extract %8[0, 0, 0, 0] : f32 from vector<1x1x1x1xf32>
    %cst_3 = arith.constant 9.765625E-4 : f32
    %10 = arith.mulf %4, %cst_3 : f32
    %cst_4 = arith.constant 1.024000e+03 : f32
    %11 = arith.mulf %cst_4, %10 : f32
    %12 = arith.mulf %11, %10 : f32
    %13 = arith.subf %9, %12 : f32
    %cst_5 = arith.constant 1.023000e+03 : f32
    %14 = arith.divf %13, %cst_5 : f32
    %cst_6 = arith.constant 0.000000e+00 : f32
    %15 = arith.maximumf %14, %cst_6 : f32
    %16 = math.sqrt %15 : f32
    %cst_7 = arith.constant 9.99999974E-6 : f32
    %17 = arith.addf %16, %cst_7 : f32
    %cst_8 = arith.constant 1.000000e+00 : f32
    %18 = arith.divf %cst_8, %17 : f32
    %c0_9 = arith.constant 0 : index
    %c0_10 = arith.constant 0 : index
    %c0_11 = arith.constant 0 : index
    %19 = vector.load %arg2[%c0_9, %c0_10, %c0_11] : memref<1x8x1xf32, #tpu.memory_space<vmem>>, vector<1x8x1xf32>
    %20 = vector.broadcast %18 : f32 to vector<1x8x1xf32>
    %21 = arith.mulf %19, %20 : vector<1x8x1xf32>
    %c0_12 = arith.constant 0 : index
    %c0_13 = arith.constant 0 : index
    %c0_14 = arith.constant 0 : index
    %22 = vector.load %arg3[%c0_12, %c0_13, %c0_14] : memref<1x8x1xf32, #tpu.memory_space<vmem>>, vector<1x8x1xf32>
    %23 = vector.broadcast %10 : f32 to vector<1x8x1xf32>
    %24 = arith.mulf %23, %21 : vector<1x8x1xf32>
    %25 = arith.subf %22, %24 : vector<1x8x1xf32>
    %26 = vector.broadcast %21 : vector<1x8x1xf32> to vector<1x8x128xf32>
    %27 = arith.mulf %0, %26 : vector<1x8x128xf32>
    %28 = vector.broadcast %25 : vector<1x8x1xf32> to vector<1x8x128xf32>
    %29 = arith.addf %27, %28 : vector<1x8x128xf32>
    %c0_15 = arith.constant 0 : index
    %c0_16 = arith.constant 0 : index
    %c0_17 = arith.constant 0 : index
    %30 = vector.load %arg4[%c0_15, %c0_16, %c0_17] : memref<1x8x128xf32, #tpu.memory_space<vmem>>, vector<1x8x128xf32>
    tpu.vector_store %arg4[%c0_15, %c0_16, %c0_17], %29 {strides = array<i32>} : memref<1x8x128xf32, #tpu.memory_space<vmem>>, vector<1x8x128xf32>,
    return
  }
  func.func @transform_0(%arg0: i32) -> (i32, i32, i32) {
    %c0_i32 = arith.constant 0 : i32
    %c0_i32_0 = arith.constant 0 : i32
    %c0_i32_1 = arith.constant 0 : i32
    return %arg0, %c0_i32, %c0_i32_0 : i32, i32, i32
  }
  func.func @transform_1(%arg0: i32) -> (i32, i32, i32) {
    %c0_i32 = arith.constant 0 : i32
    %c0_i32_0 = arith.constant 0 : i32
    %c0_i32_1 = arith.constant 0 : i32
    %c0_i32_2 = arith.constant 0 : i32
    return %c0_i32, %c0_i32_0, %c0_i32_1 : i32, i32, i32
  }
  func.func @transform_2(%arg0: i32) -> (i32, i32, i32) {
    %c0_i32 = arith.constant 0 : i32
    %c0_i32_0 = arith.constant 0 : i32
    %c0_i32_1 = arith.constant 0 : i32
    %c0_i32_2 = arith.constant 0 : i32
    return %c0_i32, %c0_i32_0, %c0_i32_1 : i32, i32, i32
  }
  func.func @transform_3(%arg0: i32) -> (i32, i32, i32) {
    %c0_i32 = arith.constant 0 : i32
    %c0_i32_0 = arith.constant 0 : i32
    %c0_i32_1 = arith.constant 0 : i32
    return %arg0, %c0_i32, %c0_i32_0 : i32, i32, i32
  }
}

</mosaic_0001>

<bundles_post_ra>
// kernel: tpu_custom_call.1
= control target key start
LH: loop header
LB: loop body
LE: loop exit
PB: predicated region body
PF: predicated region fallthrough
CT: control target
= control target key end

     0   :  { %8 = vsyncpa [#allocation3], 0  ;;  %s585_s0 = inlined_call_operand.vmem [shape: f32[2,8,128], index: 0, kind: input, shape index: {}]   ;;  %s586_s1 = inlined_call_operand.vmem [shape: f32[1,8,1], index: 1, kind: input, shape index: {}]   ;;  %s587_s2 = inlined_call_operand.vmem [shape: f32[1,8,1], index: 2, kind: input, shape index: {}]   ;;  %s588_s3 = inlined_call_operand.hbm [shape: f32[2,8,128], index: 3, kind: output, shape index: {}]  }
   0x1   :  { %10 = vsyncpa [#allocation3 + $0x1], 0  ;;  %s483_s12 = smov 0   ;;  %s485_s13 = smov 0  }
   0x2   :  { %s487_s14 = smov 0   ;;  %s489_s15 = smov 0  }
   0x3 LB: > { %s504_s16 = sadd.s32 4294967295, %s458_s15   ;;  %s326_s17 = sadd.s32 4294967294, %s458_s15   ;;  %s458_s15 = sphi %s489_s15, %s594_s15   ;;  %s454_s14 = sphi %s487_s14, %s593_s14   ;;  %s450_s13 = sphi %s485_s13, %s592_s13   ;;  %s446_s12 = sphi %s483_s12, %s591_s12  }
   0x4   : > { %s508_s18 = sadd.s32 1, %s458_s15   ;;  %s91_s19 = sadd.s32 1, %s454_s14 }
   0x5   : > { %s88_s20 = ssub.s32 %s458_s15, %s508_s18  ;;  %p101_p0 = scmp.ne.s32.totalorder %s454_s14, %s450_s13 }
   0x6   : > { %p89_p1 = scmp.eq.s32.totalorder %s88_s20, 0  ;;  %p102_p2 = scmp.eq.s32.totalorder %s504_s16, 1 }
   0x7   : > { %p107_p3 = scmp.ne.s32.totalorder %s450_s13, %s446_s12  ;;  %p108_p4 = scmp.eq.s32.totalorder %s326_s17, 1 }
   0x8   : > { %s519_s21 = scalar_select %p89_p1, %s454_s14, %s91_s19  }
   0x9   : > { %p521_p5 = por %p102_p2, %p101_p0  ;;  %p525_p6 = por %p108_p4, %p107_p3 }
   0xa   : > { %p329_p7 = scmp.ge.s32.totalorder %s458_s15, 1  ;;  %p139_p8 = scmp.lt.s32.totalorder %s458_s15, 3 }
   0xc   : > { %p140_p9 = pnand %p329_p7, %p139_p8 }
   0xd   : > { %p162_p10 = scmp.lt.s32.totalorder (!%p140_p9), %s504_s16, 1  ;;  %s461_s10 = smov (!%p140_p9), 0.0  }
   0xe   : > { %143 = sbr.rel (%p140_p9) target bundleno = 488 (0x1e8), region = 32  ;;  %s416_s20 = scalar_lea.hbm (!%p140_p9), %s588_s3, 16 }
  0x13   : > { %s163_s24 = scalar_select %p162_p10, %s504_s16, 1  ;;  %v460_v2 = vmov 1023.0   ;;  %v462_v45 = vmov 0   ;;  %v231_v46 = vld [vmem:[%s586_s1] sm:$0xff] }
  0x14   : > { %390 = vrcp.f32 %v460_v2  ;;  %388 = vset.pattern.permute.xlu1 %v462_v45  ;;  %389 = vset.pattern.permute.xlu0 %v462_v45  ;;  %v234_v51 = vld [vmem:[%s587_s2] sm:$0xff] }
  0x15   : > { %s331_s25 = sshll.u32 %s163_s24, 3 }
  0x16   : > { %s165_s28 = scalar_lea.vmem %s585_s0, %s331_s25 }
  0x17   : > { %v536_v0 = vld [vmem:[%s165_s28] sm:$0xff]  ;;  %s159_s28 = sand.u32 1, %s450_s13  }
  0x18   : > { %167 = vadd.xlane.f32.xlu0 %v536_v0  ;;  %v176_v1 = vmul.f32 %v536_v0, %v536_v0 }
  0x1a   : > { %v391_v3 = vpop.eup %390 }
  0x1b   : > { %v191_v7 = vmul.f32 1023.0, %v391_v3  ;;  %vm195_vm0 = vweird.f32 %v391_v3 }
  0x1d   : > { %v192_v10 = vsub.f32 1.0, %v191_v7 }
  0x1f   : > { %v193_v16 = vmul.f32 %v391_v3, %v192_v10 }
  0x20   : > { %177 = vadd.xlane.f32.xlu0 %v176_v1 }
  0x21   : > { %v194_v19 = vadd.f32 %v391_v3, %v193_v16 }
  0x23   : > { %v196_v22 = vsel %vm195_vm0, %v391_v3, %v194_v19 }
  0x8b   : > { %v168_v4 = vpop.xlane.xlu0 %167 }
  0x8c   : > { %v169_v5 = vrot.slane %v168_v4, 4 }
  0x8e   : > { %v170_v6 = vadd.f32 %v169_v5, %v168_v4 }
  0x90   : > { %v171_v8 = vrot.slane %v170_v6, 2 }
  0x92   : > { %v172_v9 = vadd.f32 %v171_v8, %v170_v6 }
  0x93   : > { %v178_v11 = vpop.xlane.xlu0 %177 }
  0x94   : > { %v179_v12 = vrot.slane %v178_v11, 4  ;;  %v173_v13 = vrot.slane %v172_v9, 1 }
  0x96   : > { %v180_v14 = vadd.f32 %v179_v12, %v178_v11  ;;  %v174_v15 = vadd.f32 %v173_v13, %v172_v9 }
  0x98   : > { %v181_v17 = vrot.slane %v180_v14, 2  ;;  %336 = vpush %v174_v15 }
  0x9a   : > { %v182_v18 = vadd.f32 %v181_v17, %v180_v14 }
  0x9c   : > { %v183_v20 = vrot.slane %v182_v18, 1 }
  0x9e   : > { %v184_v21 = vadd.f32 %v183_v20, %v182_v18 }
  0xa0   : > { %338 = vpush %v184_v21 }
  0xa1   : > { %340 = vpush %v196_v22 }
  0xc9   : > { %s337_s29 = spop %336 }
  0xca   : > { %s541_s30 = smul.f32 0.0009765625, %s337_s29  ;;  %s330_s29 = sshll.u32 %s159_s28, 3 }
  0xcc   : > { %s187_s4 = smul.f32 1024.0, %s541_s30  ;;  %v235_v49 = vstv %s541_s30 }
  0xce   : > { %s188_s5 = smul.f32 %s187_s4, %s541_s30  ;;  %s333_s4 = sshll.u32 %s504_s16, 3 }
  0xcf   : > { %s252_s30 = scalar_lea.sflag [#allocation3], %s159_s28 }
  0xd1   : > { %s339_s6 = spop %338 }
  0xd2   : > { %s189_s7 = ssub.f32 %s339_s6, %s188_s5  ;;  %s341_s8 = spop %340 }
  0xd4   : > { %s198_s9 = smul.f32 %s341_s8, %s189_s7  ;;  %s262_s7 = scalar_lea.hbm %s588_s3, %s333_s4 }
  0xd5   : > { %s161_s8 = scalar_lea.vmem [#allocation2], %s330_s29 }
  0xd6   : > { %s199_s11 = smax.f32 %s461_s10, %s198_s9  ;;  %s264_s9 = sshll.u32 %s161_s8, 4  ;;  %s265_s9 = int_to_ptr.vmem [resolvable:$true] %s264_s9 }
  0xd7   : > { %v200_v23 = vstv %s199_s11  ;;  %s266_s10 = sshll.u32 %s262_s7, 4  ;;  %s267_s10 = int_to_ptr.hbm [resolvable:$true] %s266_s10 }
  0xd8   : > { %392 = vrsqrt.f32 %v200_v23  ;;  %vm208_vm1 = vcmp.eq.f32.partialorder %v200_v23, inf  ;;  %v211_v31 = vand.u32 2147483648, %v200_v23  ;;  %vm210_vm2 = vcmp.eq.f32.partialorder %v200_v23, 0.0  ;;  %s410_s11 = sshra.s32 %s267_s10, 4  ;;  %s411_s11 = int_to_ptr.hbm [resolvable:$true] %s410_s11 }
  0xd9   : > { %p417_p0 = scmp.lt.s32.totalorder %s411_s11, %s588_s3 }
  0xde   : > { %v393_v24 = vpop.eup %392 }
  0xdf   : > { %v202_v25 = vmul.f32 %v393_v24, %v200_v23 }
  0xe1   : > { %v203_v26 = vmul.f32 %v393_v24, %v202_v25 }
  0xe3   : > { %v204_v27 = vmul.f32 0.5, %v203_v26 }
  0xe5   : > { %v205_v28 = vsub.f32 1.5, %v204_v27 }
  0xe7   : > { %v206_v29 = vmul.f32 %v393_v24, %v205_v28 }
  0xe9   : > { %v207_v30 = vmul.f32 %v206_v29, %v200_v23 }
  0xeb   : > { %v209_v32 = vsel %vm208_vm1, %v200_v23, %v207_v30 }
  0xec   : > { %v212_v33 = vsel %vm210_vm2, %v211_v31, %v209_v32 }
  0xed   : > { %342 = vpush %v212_v33 }
 0x11e   : > { %s343_s17 = spop %342 }
 0x11f   : > { %s214_s19 = sadd.f32 1e-05, %s343_s17  ;;  %s412_s17 = scalar_lea.hbm %s411_s11, 8 }
 0x120   : > { %p413_p11 = scmp.ne.s32.totalorder %s411_s11, %s412_s17  ;;  %p418_p1 = scmp.lt.s32.totalorder %s416_s20, %s412_s17 }
 0x121   : > { %v215_v34 = vstv %s214_s19 }
 0x122   : > { %394 = vrcp.f32 %v215_v34  ;;  %v227_v38 = vand.u32 2147483648, %v215_v34  ;;  %v225_v40 = vand.u32 2147483647, %v215_v34  ;;  %vm221_vm4 = vweird.f32 %v215_v34  ;;  %p414_p12 = pnand %p413_p11, %p521_p5  ;;  %p419_p2 = por %p418_p1, %p417_p0 }
 0x124   : > { %v228_v42 = vor.u32 1.1754944e-38, %v227_v38  ;;  %vm226_vm6 = vcmp.eq.f32.partialorder %v225_v40, 8.507059e+37  ;;  %p415_p13 = pneg %p414_p12 }
 0x126   : > { %p420_p3 = pnand %p419_p2, %p415_p13 }
 0x128   : > { %v395_v35 = vpop.eup %394 }
 0x129   : > { %v217_v36 = vmul.f32 %v395_v35, %v215_v34  ;;  %vm222_vm3 = vweird.f32 %v395_v35 }
 0x12a   : > { %vm223_vm5 = vmor %vm221_vm4, %vm222_vm3 }
 0x12b   : > { %v218_v37 = vsub.f32 1.0, %v217_v36 }
 0x12d   : > { %v219_v39 = vmul.f32 %v395_v35, %v218_v37 }
 0x12f   : > { %v220_v41 = vadd.f32 %v395_v35, %v219_v39 }
 0x131   : > { %v224_v43 = vsel %vm223_vm5, %v395_v35, %v220_v41 }
 0x132   : > { %v229_v44 = vsel %vm226_vm6, %v228_v42, %v224_v43 }
 0x133   : > { %344 = vpush %v229_v44 }
 0x164   : > { %s345_s25 = spop %344 }
 0x165   : > { %v232_v47 = vstv %s345_s25 }
 0x166   : > { %v233_v48 = vmul.f32 %v232_v47, %v231_v46 }
 0x168   : > { %240 = vperm.xlu1 %388, %v233_v48   ;;  %v236_v50 = vmul.f32 %v235_v49, %v233_v48 }
 0x16a   : > { %v237_v52 = vsub.f32 %v234_v51, %v236_v50 }
 0x170   : > { %246 = vperm.xlu1 %388, %v237_v52  }
 0x1da   : > { %v241_v53 = vpop.permute.xlu1 %240 }
 0x1db   : > { %v243_v54 = vmul.f32 %v241_v53, %v536_v0 }
 0x1e2   : > { %v247_v55 = vpop.permute.xlu1 %246 }
 0x1e3   : > { %v249_v56 = vadd.f32 %v247_v55, %v243_v54 }
 0x1e5   : > { %250 = vst [vmem:[%s161_s8] sm:$0xff] %v249_v56 }
 0x1e6   : > { %423 = shalt.err (!%p420_p3)
}
 0x1e7   : > { %346 = dma.vmem_to_hbm [thread:$0]  (%p521_p5), %s265_s9, 128, %s267_s10, %s252_s30  }
 0x1e8 PF: > { %p352_p4 = scmp.ge.s32.totalorder %s458_s15, 2  ;;  %s278_s26 = sand.u32 1, %s446_s12  }
 0x1e9   : > { %s279_s27 = scalar_lea.sflag [#allocation3], %s278_s26 }
 0x1ea   : > { %p349_p7 = pnand %p352_p4, %p525_p6 }
 0x1ec   : > { %p350_p8 = pneg %p349_p7 }
 0x1ee   : > { %441 = dma.done.wait (%p350_p8), %s279_s27, 128  }
 0x1ef   : > { %443 = vsyncadd (%p350_p8), %s279_s27, 4294967168  ;;  %p13_p9 = scmp.ge.s32.totalorder %s508_s18, 4   ;;  %s591_s12 = smov %s450_s13 }
 0x1f0   : > { %s592_s13 = smov %s454_s14  ;;  %s593_s14 = smov %s519_s21 }
 0x1f1   : > { %s594_s15 = smov %s508_s18  ;;  %15 = sbr.rel (!%p13_p9) target bundleno = 3 (0x3), region = 67 }
 0x1f6   :  { %285 = vsyncpa [#allocation3], 1 }
 0x1f7   :  { %287 = vsyncpa [#allocation3 + $0x1], 1 }

</bundles_post_ra>
